<compile_context>
chip_gen: v5e
topology: v5e:2x2
jax: 0.10.0
libtpu: 0.0.40
codegen_flags: <defaults>
</compile_context>

<pallas_src>
import functools
import math

import jax
import jax.numpy as jnp
from jax.experimental import pallas as pl
from jax.experimental.pallas import tpu as pltpu


def _softplus(x):
    # numerically-stable softplus: max(x,0) + log1p(exp(-|x|))
    return jnp.maximum(x, 0.0) + jnp.log1p(jnp.exp(-jnp.abs(x)))


def _round_up(x, m):
    return ((x + m - 1) // m) * m


def _make_fused_kernel(num_hidden, rep_dim, num_samples, output_size, compute_dtype):
    """Fully fused StochasticMlp forward for one batch tile (everything in VMEM)."""

    def kernel(*refs):
        cd = compute_dtype
        rd = rep_dim
        x1_ref, x2_ref, eps_ref = refs[0], refs[1], refs[2]
        idx = 3

        # ---- first hidden layer: split-input matmul (replaces torch.cat + fc0)
        w0a = refs[idx][...]
        w0b = refs[idx + 1][...]
        b0 = refs[idx + 2][...]
        idx += 3
        h = (
            jnp.dot(x1_ref[...], w0a, preferred_element_type=jnp.float32)
            + jnp.dot(x2_ref[...], w0b, preferred_element_type=jnp.float32)
            + b0
        )
        h = jnp.maximum(h, 0.0)  # F.relu

        # ---- remaining hidden layers
        for _ in range(num_hidden - 1):
            w = refs[idx][...]
            b = refs[idx + 1][...]
            idx += 2
            h = jnp.dot(h.astype(cd), w, preferred_element_type=jnp.float32) + b
            h = jnp.maximum(h, 0.0)

        w_head = refs[idx][...]      # (H, 2*rd + osz) = [W_mu | W_logvar | W_mu@W_last]
        b_head = refs[idx + 1][...]  # (1, 2*rd + osz)
        w_last = refs[idx + 2][...]  # (rd, osz)
        mu_std_ref = refs[idx + 3]   # (tb, 2*rd)
        out_ref = refs[idx + 4]      # (ns, tb, osz)

        # ---- merged [mu | logvar | mu_proj] head: single MXU pass
        heads = jnp.dot(h.astype(cd), w_head, preferred_element_type=jnp.float32) + b_head

        # softplus only on the logvar lanes via an iota lane-select (no slice+concat;
        # the extra softplus on the other lanes rides the otherwise-idle EUP slot).
        lane = jax.lax.broadcasted_iota(jnp.int32, heads.shape, 1)
        is_logvar = jnp.logical_and(lane >= rd, lane < 2 * rd)
        heads = jnp.where(is_logvar, _softplus(heads), heads)

        # lane-dense store of [mu | std]
        mu_std_ref[...] = heads[:, : 2 * rd]
        std = heads[:, rd: 2 * rd]            # (tb, rd) f32
        mu_proj = heads[:, 2 * rd:]           # (tb, osz) f32 = mu @ W_last + b_last

        # ---- reparameterized samples: ONE stacked matmul for all num_samples
        # Z = [eps_0*std ; eps_1*std ; ... ] stacked on the sublane axis.
        std_cd = std.astype(cd)
        tb = std.shape[0]
        z = jnp.concatenate(
            [eps_ref[s] * std_cd for s in range(num_samples)], axis=0
        )  # (ns*tb, rd), compute dtype
        o = jnp.dot(z, w_last, preferred_element_type=jnp.float32)  # (ns*tb, osz)

        # out[s, b] = (eps_s * std)[b] @ W_last + (mu @ W_last + b_last)[b]
        for s in range(num_samples):
            out_ref[s] = o[s * tb:(s + 1) * tb, :] + mu_proj

    return kernel


class StochasticMlpPallas:
    def __init__(
        self,
        hidden_sizes,
        output_size,
        input_size,
        num_samples,
        rep_dim,
        init_w=0.003,
        b_init_value=0.1,
        seed=0,
        compute_dtype=jnp.bfloat16,   # MXU operand dtype; accumulation stays f32
        batch_tile=512,               # per-step batch tile (VMEM budget set explicitly)
    ):
        assert len(hidden_sizes) >= 1
        self.hidden_sizes = tuple(hidden_sizes)
        self.output_size = output_size
        self.input_size = input_size
        self.num_samples = num_samples
        self.rep_dim = rep_dim
        self.compute_dtype = compute_dtype
        self.batch_tile = batch_tile

        key = jax.random.PRNGKey(seed)

        # hidden layers: fanin_init weights, constant bias (matches ptu.fanin_init)
        self.hidden_ws = []   # (in, out), stored in compute_dtype
        self.hidden_bs = []   # (1, out), f32
        in_size = input_size
        for next_size in self.hidden_sizes:
            key, kw = jax.random.split(key)
            bound = 1.0 / math.sqrt(in_size)
            w = jax.random.uniform(kw, (in_size, next_size), jnp.float32, -bound, bound)
            self.hidden_ws.append(w.astype(compute_dtype))
            self.hidden_bs.append(jnp.full((1, next_size), b_init_value, jnp.float32))
            in_size = next_size

        def _uni(k, shape):
            return jax.random.uniform(k, shape, jnp.float32, -init_w, init_w)

        key, k1, k2, k3, k4, k5, k6 = jax.random.split(key, 7)
        w_mu = _uni(k1, (in_size, rep_dim))
        b_mu = _uni(k2, (1, rep_dim))
        w_logvar = _uni(k3, (in_size, rep_dim))
        b_logvar = _uni(k4, (1, rep_dim))
        w_last = _uni(k5, (rep_dim, output_size))
        b_last = _uni(k6, (1, output_size))

        # Fold mu -> last_fc into the head. Products done in f32 BEFORE the bf16 cast
        # to avoid double-rounding the mu path.
        w_mu_last = w_mu @ w_last                       # (H, osz)
        b_mu_last = b_mu @ w_last + b_last              # (1, osz)
        self.w_head = jnp.concatenate([w_mu, w_logvar, w_mu_last], axis=1).astype(compute_dtype)
        self.b_head = jnp.concatenate([b_mu, b_logvar, b_mu_last], axis=1)   # f32
        self.w_last = w_last.astype(compute_dtype)

    @functools.partial(jax.jit, static_argnums=0)
    def __call__(self, input1, input2, eps):
        batch, dim1 = input1.shape
        dim2 = input2.shape[1]
        assert dim1 + dim2 == self.input_size
        ns, rd, osz = self.num_samples, self.rep_dim, self.output_size
        cd = self.compute_dtype

        # Batch tile: whole batch when tiny; for mid-size batches split into >= 2
        # "parallel" tiles so both TensorCores of a v7x megacore get work; cap at
        # batch_tile for VMEM on larger batches.
        if batch <= 64:
            tb = batch
        elif batch <= self.batch_tile:
            tb = _round_up(pl.cdiv(batch, 2), 16)
        else:
            tb = self.batch_tile
        grid = (pl.cdiv(batch, tb),)

        # split fc0's weight instead of materializing concat(input1, input2) in HBM
        w0a = self.hidden_ws[0][:dim1]
        w0b = self.hidden_ws[0][dim1:]

        x1 = input1.astype(cd)
        x2 = input2.astype(cd)
        # repeat_interleave(num_samples, dim=0) handled in-kernel:
        # eps row b*ns + s  ->  eps3[s, b, :]; cast to bf16 (halves its DMA traffic).
        eps3 = eps.reshape(batch, ns, rd).transpose(1, 0, 2).astype(cd)

        weights = [w0a, w0b, self.hidden_bs[0]]
        for w, b in zip(self.hidden_ws[1:], self.hidden_bs[1:]):
            weights += [w, b]
        weights += [self.w_head, self.b_head, self.w_last]

        in_specs = [
            pl.BlockSpec((tb, dim1), lambda i: (i, 0)),
            pl.BlockSpec((tb, dim2), lambda i: (i, 0)),
            pl.BlockSpec((ns, tb, rd), lambda i: (0, i, 0)),
        ]
        # weights / biases: constant index_map -> stay VMEM-resident across the grid
        in_specs += [pl.BlockSpec(w.shape, lambda i: (0, 0)) for w in weights]

        out_specs = (
            pl.BlockSpec((tb, 2 * rd), lambda i: (i, 0)),
            pl.BlockSpec((ns, tb, osz), lambda i: (0, i, 0)),
        )
        out_shape = (
            jax.ShapeDtypeStruct((batch, 2 * rd), jnp.float32),
            jax.ShapeDtypeStruct((ns, batch, osz), jnp.float32),
        )

        # Explicit VMEM budget: resident weights (double-buffered by the pipeliner)
        # + double-buffered streamed activation/output tiles + compiler headroom.
        bpe = jnp.dtype(cd).itemsize
        weight_bytes = sum(int(w.size) * w.dtype.itemsize for w in weights)
        stream_bytes = (tb * dim1 + tb * dim2 + ns * tb * rd) * bpe \
                     + (tb * 2 * rd + ns * tb * osz) * 4
        vmem_limit = int(min(max(2 * weight_bytes + 2 * stream_bytes + (8 << 20),
                                 32 << 20), 100 << 20))

        mu_std, out3 = pl.pallas_call(
            _make_fused_kernel(len(self.hidden_sizes), rd, ns, osz, cd),
            out_shape=out_shape,
            grid_spec=pltpu.PrefetchScalarGridSpec(
                num_scalar_prefetch=0,
                grid=grid,
                in_specs=in_specs,
                out_specs=out_specs,
            ),
            compiler_params=pltpu.CompilerParams(
                dimension_semantics=("parallel",),  # shard batch tiles over both TCs
                vmem_limit_bytes=vmem_limit,
            ),
        )(x1, x2, eps3, *weights)

        mu = mu_std[:, :rd]
        std = mu_std[:, rd:]
        # (ns, batch, osz) -> repeat_interleave row order (batch*ns, osz)
        output = out3.transpose(1, 0, 2).reshape(batch * ns, osz)
        return output, mu, std


def _reference(model, input1, input2, eps):
    """Pure-JAX f32 reference using the same (bf16-stored) parameters."""
    rd, ns = model.rep_dim, model.num_samples
    h = jnp.concatenate([input1, input2], axis=1)
    for w, b in zip(model.hidden_ws, model.hidden_bs):
        h = jnp.maximum(h @ w.astype(jnp.float32) + b, 0.0)
    heads = h @ model.w_head.astype(jnp.float32) + model.b_head
    mu = heads[:, :rd]
    std = jax.nn.softplus(heads[:, rd:2 * rd])
    mu_proj = heads[:, 2 * rd:]
    std_r = jnp.repeat(std, ns, axis=0)
    mu_proj_r = jnp.repeat(mu_proj, ns, axis=0)
    out = (eps * std_r) @ model.w_last.astype(jnp.float32) + mu_proj_r
    return out, mu, std


if __name__ == "__main__":
    # small shapes consistent with the module
    batch = 2
    dim1, dim2 = 8, 8            # input1 / input2 feature dims -> input_size = 16
    hidden_sizes = (32, 32)
    rep_dim = 8
    output_size = 8
    num_samples = 4

    model = StochasticMlpPallas(
        hidden_sizes=hidden_sizes,
        output_size=output_size,
        input_size=dim1 + dim2,
        num_samples=num_samples,
        rep_dim=rep_dim,
        seed=0,
    )

    key = jax.random.PRNGKey(0)
    k1, k2, k3 = jax.random.split(key, 3)
    input1 = jax.random.normal(k1, (batch, dim1), jnp.float32)
    input2 = jax.random.normal(k2, (batch, dim2), jnp.float32)
    # torch.randn_like(mu.repeat_interleave(...)) -> eps drawn outside the kernel
    eps = jax.random.normal(k3, (batch * num_samples, rep_dim), jnp.float32)

    output, mu, std = model(input1, input2, eps)
    jax.block_until_ready((output, mu, std))

    assert output.shape == (batch * num_samples, output_size)
    assert mu.shape == (batch, rep_dim)
    assert std.shape == (batch, rep_dim)
    assert bool(jnp.all(std > 0.0))              # softplus output is positive
    assert bool(jnp.all(jnp.isfinite(output)))

    out_ref, mu_ref, std_ref = _reference(model, input1, input2, eps)
    assert bool(jnp.allclose(mu, mu_ref, atol=2e-2, rtol=2e-2))
    assert bool(jnp.allclose(std, std_ref, atol=2e-2, rtol=2e-2))
    assert bool(jnp.allclose(output, out_ref, atol=2e-2, rtol=2e-2))

    print("KERNEL_OK")
</pallas_src>

<mosaic_0001>
module attributes {stable_mosaic.version = 11 : i64} {
  func.func @kernel(%arg0: i32, %arg1: memref<2x8xbf16, #tpu.memory_space<vmem>>, %arg2: memref<2x8xbf16, #tpu.memory_space<vmem>>, %arg3: memref<4x2x8xbf16, #tpu.memory_space<vmem>>, %arg4: memref<8x32xbf16, #tpu.memory_space<vmem>>, %arg5: memref<8x32xbf16, #tpu.memory_space<vmem>>, %arg6: memref<1x32xf32, #tpu.memory_space<vmem>>, %arg7: memref<32x32xbf16, #tpu.memory_space<vmem>>, %arg8: memref<1x32xf32, #tpu.memory_space<vmem>>, %arg9: memref<32x24xbf16, #tpu.memory_space<vmem>>, %arg10: memref<1x24xf32, #tpu.memory_space<vmem>>, %arg11: memref<8x8xbf16, #tpu.memory_space<vmem>>, %arg12: memref<2x16xf32, #tpu.memory_space<vmem>>, %arg13: memref<4x2x8xf32, #tpu.memory_space<vmem>>) attributes {dimension_semantics = [#tpu.dimension_semantics<parallel>], iteration_bounds = array<i64: 1>, scalar_prefetch = 0 : i64, scratch_operands = 0 : i64, tpu.core_type = #tpu.core_type<tc>, window_params = [{transform_indices = @transform_0, window_bounds = array<i64: 2, 8>}, {transform_indices = @transform_1, window_bounds = array<i64: 2, 8>}, {transform_indices = @transform_2, window_bounds = array<i64: 4, 2, 8>}, {pipeline_mode = #tpu.pipeline_mode<synchronous>, transform_indices = @transform_3, window_bounds = array<i64: 8, 32>}, {pipeline_mode = #tpu.pipeline_mode<synchronous>, transform_indices = @transform_4, window_bounds = array<i64: 8, 32>}, {pipeline_mode = #tpu.pipeline_mode<synchronous>, transform_indices = @transform_5, window_bounds = array<i64: 1, 32>}, {pipeline_mode = #tpu.pipeline_mode<synchronous>, transform_indices = @transform_6, window_bounds = array<i64: 32, 32>}, {pipeline_mode = #tpu.pipeline_mode<synchronous>, transform_indices = @transform_7, window_bounds = array<i64: 1, 32>}, {pipeline_mode = #tpu.pipeline_mode<synchronous>, transform_indices = @transform_8, window_bounds = array<i64: 32, 24>}, {pipeline_mode = #tpu.pipeline_mode<synchronous>, transform_indices = @transform_9, window_bounds = array<i64: 1, 24>}, {pipeline_mode = #tpu.pipeline_mode<synchronous>, transform_indices = @transform_10, window_bounds = array<i64: 8, 8>}, {transform_indices = @transform_11, window_bounds = array<i64: 2, 16>}, {transform_indices = @transform_12, window_bounds = array<i64: 4, 2, 8>}]} {
    %c0 = arith.constant 0 : index
    %c0_0 = arith.constant 0 : index
    %0 = vector.load %arg4[%c0, %c0_0] : memref<8x32xbf16, #tpu.memory_space<vmem>>, vector<8x32xbf16>
    %c0_1 = arith.constant 0 : index
    %c0_2 = arith.constant 0 : index
    %1 = vector.load %arg5[%c0_1, %c0_2] : memref<8x32xbf16, #tpu.memory_space<vmem>>, vector<8x32xbf16>
    %c0_3 = arith.constant 0 : index
    %c0_4 = arith.constant 0 : index
    %2 = vector.load %arg6[%c0_3, %c0_4] : memref<1x32xf32, #tpu.memory_space<vmem>>, vector<1x32xf32>
    %c0_5 = arith.constant 0 : index
    %c0_6 = arith.constant 0 : index
    %3 = vector.load %arg1[%c0_5, %c0_6] : memref<2x8xbf16, #tpu.memory_space<vmem>>, vector<2x8xbf16>
    %cst = arith.constant dense<0.000000e+00> : vector<2x32xf32>
    %4 = tpu.matmul %3, %0, %cst {dimension_numbers = #tpu.dot_dimension_numbers<[1], [0], [0], [1], [0, 0, 1, 1], [], []>} : vector<2x8xbf16>, vector<8x32xbf16>, vector<2x32xf32> -> vector<2x32xf32>
    %c0_7 = arith.constant 0 : index
    %c0_8 = arith.constant 0 : index
    %5 = vector.load %arg2[%c0_7, %c0_8] : memref<2x8xbf16, #tpu.memory_space<vmem>>, vector<2x8xbf16>
    %cst_9 = arith.constant dense<0.000000e+00> : vector<2x32xf32>
    %6 = tpu.matmul %5, %1, %cst_9 {dimension_numbers = #tpu.dot_dimension_numbers<[1], [0], [0], [1], [0, 0, 1, 1], [], []>} : vector<2x8xbf16>, vector<8x32xbf16>, vector<2x32xf32> -> vector<2x32xf32>
    %7 = arith.addf %4, %6 : vector<2x32xf32>
    %8 = vector.broadcast %2 : vector<1x32xf32> to vector<2x32xf32>
    %9 = arith.addf %7, %8 : vector<2x32xf32>
    %cst_10 = arith.constant 0.000000e+00 : f32
    %10 = vector.broadcast %cst_10 : f32 to vector<2x32xf32>
    %11 = arith.maximumf %9, %10 : vector<2x32xf32>
    %c0_11 = arith.constant 0 : index
    %c0_12 = arith.constant 0 : index
    %12 = vector.load %arg7[%c0_11, %c0_12] : memref<32x32xbf16, #tpu.memory_space<vmem>>, vector<32x32xbf16>
    %c0_13 = arith.constant 0 : index
    %c0_14 = arith.constant 0 : index
    %13 = vector.load %arg8[%c0_13, %c0_14] : memref<1x32xf32, #tpu.memory_space<vmem>>, vector<1x32xf32>
    %14 = arith.truncf %11 : vector<2x32xf32> to vector<2x32xbf16>
    %cst_15 = arith.constant dense<0.000000e+00> : vector<2x32xf32>
    %15 = tpu.matmul %14, %12, %cst_15 {dimension_numbers = #tpu.dot_dimension_numbers<[1], [0], [0], [1], [0, 0, 1, 1], [], []>} : vector<2x32xbf16>, vector<32x32xbf16>, vector<2x32xf32> -> vector<2x32xf32>
    %16 = vector.broadcast %13 : vector<1x32xf32> to vector<2x32xf32>
    %17 = arith.addf %15, %16 : vector<2x32xf32>
    %cst_16 = arith.constant 0.000000e+00 : f32
    %18 = vector.broadcast %cst_16 : f32 to vector<2x32xf32>
    %19 = arith.maximumf %17, %18 : vector<2x32xf32>
    %c0_17 = arith.constant 0 : index
    %c0_18 = arith.constant 0 : index
    %20 = vector.load %arg9[%c0_17, %c0_18] : memref<32x24xbf16, #tpu.memory_space<vmem>>, vector<32x24xbf16>
    %c0_19 = arith.constant 0 : index
    %c0_20 = arith.constant 0 : index
    %21 = vector.load %arg10[%c0_19, %c0_20] : memref<1x24xf32, #tpu.memory_space<vmem>>, vector<1x24xf32>
    %c0_21 = arith.constant 0 : index
    %c0_22 = arith.constant 0 : index
    %22 = vector.load %arg11[%c0_21, %c0_22] : memref<8x8xbf16, #tpu.memory_space<vmem>>, vector<8x8xbf16>
    %23 = arith.truncf %19 : vector<2x32xf32> to vector<2x32xbf16>
    %cst_23 = arith.constant dense<0.000000e+00> : vector<2x24xf32>
    %24 = tpu.matmul %23, %20, %cst_23 {dimension_numbers = #tpu.dot_dimension_numbers<[1], [0], [0], [1], [0, 0, 1, 1], [], []>} : vector<2x32xbf16>, vector<32x24xbf16>, vector<2x24xf32> -> vector<2x24xf32>
    %25 = vector.broadcast %21 : vector<1x24xf32> to vector<2x24xf32>
    %26 = arith.addf %24, %25 : vector<2x24xf32>
    %27 = tpu.iota {dimensions = array<i32: 1>} : vector<2x24xi32>
    %c8_i32 = arith.constant 8 : i32
    %28 = vector.broadcast %c8_i32 : i32 to vector<2x24xi32>
    %29 = arith.cmpi sge, %27, %28 : vector<2x24xi32>
    %c16_i32 = arith.constant 16 : i32
    %30 = vector.broadcast %c16_i32 : i32 to vector<2x24xi32>
    %31 = arith.cmpi slt, %27, %30 : vector<2x24xi32>
    %32 = arith.andi %29, %31 : vector<2x24xi1>
    %cst_24 = arith.constant 0.000000e+00 : f32
    %33 = vector.broadcast %cst_24 : f32 to vector<2x24xf32>
    %34 = arith.maximumf %26, %33 : vector<2x24xf32>
    %35 = math.absf %26 : vector<2x24xf32>
    %cst_25 = arith.constant 0.000000e+00 : f32
    %36 = vector.broadcast %cst_25 : f32 to vector<2x24xf32>
    %37 = arith.subf %36, %35 : vector<2x24xf32>
    %38 = math.exp %37 : vector<2x24xf32>
    %39 = math.log1p %38 : vector<2x24xf32>
    %40 = arith.addf %34, %39 : vector<2x24xf32>
    %41 = arith.select %32, %40, %26 : vector<2x24xi1>, vector<2x24xf32>
    %42 = vector.extract_strided_slice %41 {offsets = [0, 0], sizes = [2, 16], strides = [1, 1]} : vector<2x24xf32> to vector<2x16xf32>
    %c0_26 = arith.constant 0 : index
    %c0_27 = arith.constant 0 : index
    %43 = vector.load %arg12[%c0_26, %c0_27] : memref<2x16xf32, #tpu.memory_space<vmem>>, vector<2x16xf32>
    tpu.vector_store %arg12[%c0_26, %c0_27], %42 {strides = array<i32>} : memref<2x16xf32, #tpu.memory_space<vmem>>, vector<2x16xf32>,
    %44 = vector.extract_strided_slice %41 {offsets = [0, 8], sizes = [2, 8], strides = [1, 1]} : vector<2x24xf32> to vector<2x8xf32>
    %45 = vector.extract_strided_slice %41 {offsets = [0, 16], sizes = [2, 8], strides = [1, 1]} : vector<2x24xf32> to vector<2x8xf32>
    %46 = arith.truncf %44 : vector<2x8xf32> to vector<2x8xbf16>
    %c0_28 = arith.constant 0 : index
    %c0_29 = arith.constant 0 : index
    %c0_30 = arith.constant 0 : index
    %47 = vector.load %arg3[%c0_28, %c0_29, %c0_30] : memref<4x2x8xbf16, #tpu.memory_space<vmem>>, vector<1x2x8xbf16>
    %48 = vector.shape_cast %47 : vector<1x2x8xbf16> to vector<2x8xbf16>
    %49 = arith.mulf %48, %46 : vector<2x8xbf16>
    %c1 = arith.constant 1 : index
    %c0_31 = arith.constant 0 : index
    %c0_32 = arith.constant 0 : index
    %50 = vector.load %arg3[%c1, %c0_31, %c0_32] : memref<4x2x8xbf16, #tpu.memory_space<vmem>>, vector<1x2x8xbf16>
    %51 = vector.shape_cast %50 : vector<1x2x8xbf16> to vector<2x8xbf16>
    %52 = arith.mulf %51, %46 : vector<2x8xbf16>
    %c2 = arith.constant 2 : index
    %c0_33 = arith.constant 0 : index
    %c0_34 = arith.constant 0 : index
    %53 = vector.load %arg3[%c2, %c0_33, %c0_34] : memref<4x2x8xbf16, #tpu.memory_space<vmem>>, vector<1x2x8xbf16>
    %54 = vector.shape_cast %53 : vector<1x2x8xbf16> to vector<2x8xbf16>
    %55 = arith.mulf %54, %46 : vector<2x8xbf16>
    %c3 = arith.constant 3 : index
    %c0_35 = arith.constant 0 : index
    %c0_36 = arith.constant 0 : index
    %56 = vector.load %arg3[%c3, %c0_35, %c0_36] : memref<4x2x8xbf16, #tpu.memory_space<vmem>>, vector<1x2x8xbf16>
    %57 = vector.shape_cast %56 : vector<1x2x8xbf16> to vector<2x8xbf16>
    %58 = arith.mulf %57, %46 : vector<2x8xbf16>
    %59 = tpu.concatenate %49, %52, %55, %58 in 0 : vector<2x8xbf16>, vector<2x8xbf16>, vector<2x8xbf16>, vector<2x8xbf16> -> vector<8x8xbf16>
    %cst_37 = arith.constant dense<0.000000e+00> : vector<8x8xf32>
    %60 = tpu.matmul %59, %22, %cst_37 {dimension_numbers = #tpu.dot_dimension_numbers<[1], [0], [0], [1], [0, 0, 1, 1], [], []>} : vector<8x8xbf16>, vector<8x8xbf16>, vector<8x8xf32> -> vector<8x8xf32>
    %61 = vector.extract_strided_slice %60 {offsets = [0, 0], sizes = [2, 8], strides = [1, 1]} : vector<8x8xf32> to vector<2x8xf32>
    %62 = arith.addf %61, %45 : vector<2x8xf32>
    %c0_38 = arith.constant 0 : index
    %c0_39 = arith.constant 0 : index
    %c0_40 = arith.constant 0 : index
    %63 = vector.load %arg13[%c0_38, %c0_39, %c0_40] : memref<4x2x8xf32, #tpu.memory_space<vmem>>, vector<1x2x8xf32>
    %64 = vector.shape_cast %63 : vector<1x2x8xf32> to vector<2x8xf32>
    %65 = vector.shape_cast %62 : vector<2x8xf32> to vector<1x2x8xf32>
    tpu.vector_store %arg13[%c0_38, %c0_39, %c0_40], %65 {strides = array<i32>} : memref<4x2x8xf32, #tpu.memory_space<vmem>>, vector<1x2x8xf32>,
    %66 = vector.extract_strided_slice %60 {offsets = [2, 0], sizes = [2, 8], strides = [1, 1]} : vector<8x8xf32> to vector<2x8xf32>
    %67 = arith.addf %66, %45 : vector<2x8xf32>
    %c1_41 = arith.constant 1 : index
    %c0_42 = arith.constant 0 : index
    %c0_43 = arith.constant 0 : index
    %68 = vector.load %arg13[%c1_41, %c0_42, %c0_43] : memref<4x2x8xf32, #tpu.memory_space<vmem>>, vector<1x2x8xf32>
    %69 = vector.shape_cast %68 : vector<1x2x8xf32> to vector<2x8xf32>
    %70 = vector.shape_cast %67 : vector<2x8xf32> to vector<1x2x8xf32>
    tpu.vector_store %arg13[%c1_41, %c0_42, %c0_43], %70 {strides = array<i32>} : memref<4x2x8xf32, #tpu.memory_space<vmem>>, vector<1x2x8xf32>,
    %71 = vector.extract_strided_slice %60 {offsets = [4, 0], sizes = [2, 8], strides = [1, 1]} : vector<8x8xf32> to vector<2x8xf32>
    %72 = arith.addf %71, %45 : vector<2x8xf32>
    %c2_44 = arith.constant 2 : index
    %c0_45 = arith.constant 0 : index
    %c0_46 = arith.constant 0 : index
    %73 = vector.load %arg13[%c2_44, %c0_45, %c0_46] : memref<4x2x8xf32, #tpu.memory_space<vmem>>, vector<1x2x8xf32>
    %74 = vector.shape_cast %73 : vector<1x2x8xf32> to vector<2x8xf32>
    %75 = vector.shape_cast %72 : vector<2x8xf32> to vector<1x2x8xf32>
    tpu.vector_store %arg13[%c2_44, %c0_45, %c0_46], %75 {strides = array<i32>} : memref<4x2x8xf32, #tpu.memory_space<vmem>>, vector<1x2x8xf32>,
    %76 = vector.extract_strided_slice %60 {offsets = [6, 0], sizes = [2, 8], strides = [1, 1]} : vector<8x8xf32> to vector<2x8xf32>
    %77 = arith.addf %76, %45 : vector<2x8xf32>
    %c3_47 = arith.constant 3 : index
    %c0_48 = arith.constant 0 : index
    %c0_49 = arith.constant 0 : index
    %78 = vector.load %arg13[%c3_47, %c0_48, %c0_49] : memref<4x2x8xf32, #tpu.memory_space<vmem>>, vector<1x2x8xf32>
    %79 = vector.shape_cast %78 : vector<1x2x8xf32> to vector<2x8xf32>
    %80 = vector.shape_cast %77 : vector<2x8xf32> to vector<1x2x8xf32>
    tpu.vector_store %arg13[%c3_47, %c0_48, %c0_49], %80 {strides = array<i32>} : memref<4x2x8xf32, #tpu.memory_space<vmem>>, vector<1x2x8xf32>,
    return
  }
  func.func @transform_0(%arg0: i32) -> (i32, i32) {
    %c0_i32 = arith.constant 0 : i32
    %c0_i32_0 = arith.constant 0 : i32
    return %arg0, %c0_i32 : i32, i32
  }
  func.func @transform_1(%arg0: i32) -> (i32, i32) {
    %c0_i32 = arith.constant 0 : i32
    %c0_i32_0 = arith.constant 0 : i32
    return %arg0, %c0_i32 : i32, i32
  }
  func.func @transform_2(%arg0: i32) -> (i32, i32, i32) {
    %c0_i32 = arith.constant 0 : i32
    %c0_i32_0 = arith.constant 0 : i32
    %c0_i32_1 = arith.constant 0 : i32
    return %c0_i32, %arg0, %c0_i32_0 : i32, i32, i32
  }
  func.func @transform_3(%arg0: i32) -> (i32, i32) {
    %c0_i32 = arith.constant 0 : i32
    %c0_i32_0 = arith.constant 0 : i32
    %c0_i32_1 = arith.constant 0 : i32
    return %c0_i32, %c0_i32_0 : i32, i32
  }
  func.func @transform_4(%arg0: i32) -> (i32, i32) {
    %c0_i32 = arith.constant 0 : i32
    %c0_i32_0 = arith.constant 0 : i32
    %c0_i32_1 = arith.constant 0 : i32
    return %c0_i32, %c0_i32_0 : i32, i32
  }
  func.func @transform_5(%arg0: i32) -> (i32, i32) {
    %c0_i32 = arith.constant 0 : i32
    %c0_i32_0 = arith.constant 0 : i32
    %c0_i32_1 = arith.constant 0 : i32
    return %c0_i32, %c0_i32_0 : i32, i32
  }
  func.func @transform_6(%arg0: i32) -> (i32, i32) {
    %c0_i32 = arith.constant 0 : i32
    %c0_i32_0 = arith.constant 0 : i32
    %c0_i32_1 = arith.constant 0 : i32
    return %c0_i32, %c0_i32_0 : i32, i32
  }
  func.func @transform_7(%arg0: i32) -> (i32, i32) {
    %c0_i32 = arith.constant 0 : i32
    %c0_i32_0 = arith.constant 0 : i32
    %c0_i32_1 = arith.constant 0 : i32
    return %c0_i32, %c0_i32_0 : i32, i32
  }
  func.func @transform_8(%arg0: i32) -> (i32, i32) {
    %c0_i32 = arith.constant 0 : i32
    %c0_i32_0 = arith.constant 0 : i32
    %c0_i32_1 = arith.constant 0 : i32
    return %c0_i32, %c0_i32_0 : i32, i32
  }
  func.func @transform_9(%arg0: i32) -> (i32, i32) {
    %c0_i32 = arith.constant 0 : i32
    %c0_i32_0 = arith.constant 0 : i32
    %c0_i32_1 = arith.constant 0 : i32
    return %c0_i32, %c0_i32_0 : i32, i32
  }
  func.func @transform_10(%arg0: i32) -> (i32, i32) {
    %c0_i32 = arith.constant 0 : i32
    %c0_i32_0 = arith.constant 0 : i32
    %c0_i32_1 = arith.constant 0 : i32
    return %c0_i32, %c0_i32_0 : i32, i32
  }
  func.func @transform_11(%arg0: i32) -> (i32, i32) {
    %c0_i32 = arith.constant 0 : i32
    %c0_i32_0 = arith.constant 0 : i32
    return %arg0, %c0_i32 : i32, i32
  }
  func.func @transform_12(%arg0: i32) -> (i32, i32, i32) {
    %c0_i32 = arith.constant 0 : i32
    %c0_i32_0 = arith.constant 0 : i32
    %c0_i32_1 = arith.constant 0 : i32
    return %c0_i32, %arg0, %c0_i32_0 : i32, i32, i32
  }
}

</mosaic_0001>

<bundles_post_ra>
// kernel: a_call__.1
= control target key start
LH: loop header
LB: loop body
LE: loop exit
PB: predicated region body
PF: predicated region fallthrough
CT: control target
= control target key end

     0   :  { %18 = vsyncpa [#allocation3], 0  ;;  %s381_s24 = smov [#allocation2]   ;;  %s382_s26 = smov 64   ;;  %s517_s0 = inlined_call_operand.vmem [shape: bf16[2,8], index: 0, kind: input, shape index: {}]   ;;  %s518_s1 = inlined_call_operand.vmem [shape: bf16[2,8], index: 1, kind: input, shape index: {}]   ;;  %s519_s2 = inlined_call_operand.vmem [shape: bf16[4,2,8], index: 2, kind: input, shape index: {}]   ;;  %s520_s3 = inlined_call_operand.vmem [shape: bf16[8,32], index: 3, kind: input, shape index: {}]   ;;  %s521_s4 = inlined_call_operand.vmem [shape: bf16[8,32], index: 4, kind: input, shape index: {}]   ;;  %s522_s5 = inlined_call_operand.vmem [shape: f32[1,32], index: 5, kind: input, shape index: {}, may-alias: {5,7}]   ;;  %s523_s6 = inlined_call_operand.hbm [shape: bf16[32,32], index: 6, kind: input, shape index: {}]   ;;  %s524_s7 = inlined_call_operand.vmem [shape: f32[1,32], index: 7, kind: input, shape index: {}, may-alias: {5,7}]   ;;  %s525_s8 = inlined_call_operand.vmem [shape: bf16[32,24], index: 8, kind: input, shape index: {}]   ;;  %s526_s9 = inlined_call_operand.vmem [shape: f32[1,24], index: 9, kind: input, shape index: {}]   ;;  %s527_s10 = inlined_call_operand.vmem [shape: bf16[8,8], index: 10, kind: input, shape index: {}]   ;;  %s528_s11 = inlined_call_operand.vmem [shape: f32[2,16], index: 11, kind: output, shape index: {0}]   ;;  %s529_s12 = inlined_call_operand.vmem [shape: f32[4,2,8], index: 12, kind: output, shape index: {1}]  }
   0x1   :  { %s35_s23 = sshll.u32 %s523_s6, 4  ;;  %s37_s25 = sshll.u32 %s381_s24, 4  ;;  %s36_s23 = int_to_ptr.hbm [resolvable:$true] %s35_s23  ;;  %s38_s25 = int_to_ptr.vmem [resolvable:$true] %s37_s25 }
   0x2   :  { %s383_s27 = smov 4  }
   0x3   :  { %43 = dma.hbm_to_vmem [thread:$0]  %s36_s23, 256, %s38_s25, [#allocation3], %s382_s26, %s382_s26, %s383_s27  }
   0x4   :  { %379 = dma.done.wait [#allocation3], 256  }
   0x5   :  { %380 = vsyncadd [#allocation3], 4294967040  ;;  %vm66_vm0 = vcmask 1043456   ;;  %v58_v0 = vld [vmem:[%s521_s4] sm:$0xf]  ;;  %vm62_vm1 = vcmask 64512   ;;  %v184_v33 = vlaneseq }
   0x6   :  { %v57_v1 = vld [vmem:[%s520_s3] sm:$0xf]  ;;  %v68_v2 = vsel %vm66_vm0, %v58_v0, 0  ;;  %v340_v6 = vld [vmem:[#allocation2 + $0x8] sm:$0xff]  ;;  %vm128_vm2 = vcmask 261120   ;;  %vm205_vm7 = vcmask 123904  }
   0x7   :  { %v87_v3 = vsel %vm66_vm0, %v57_v1, 0  ;;  %v61_v4 = vld [vmem:[%s518_s1] sm:$0x1]  ;;  %77 = vmatpush.bf16.msra.mxu0 %v68_v2  ;;  %138 = vmatpush.bf16.msra.mxu2 %v340_v6  ;;  %v342_v17 = vld [vmem:[%s525_s8 + $0x8] sm:$0xff]  ;;  %v185_v36 = vand.u32 127, %v184_v33  ;;  %s385_s22 = smov 120  }
   0x8   :  { %96 = vmatpush.bf16.msra.mxu1 %v87_v3  ;;  %v60_v5 = vld [vmem:[%s517_s0] sm:$0x1]  ;;  %177 = vmatpush.bf16.msra.mxu3 %v342_v17  ;;  %v332_v53 = vld [vmem:[%s519_s2 + $0x1] sm:$0x1]  ;;  %v333_v54 = vld [vmem:[%s519_s2 + $0x2] sm:$0x1] }
   0x9   :  { %v339_v7 = vld [vmem:[#allocation2] sm:$0xff]  ;;  %vm186_vm3 = vcmp.ge.s32.totalorder %v185_v36, 8  ;;  %vm187_vm4 = vcmp.lt.s32.totalorder %v185_v36, 16  ;;  %v219_v56 = vunpack.c.l.bf16 %v332_v53  ;;  %v224_v57 = vunpack.c.l.bf16 %v333_v54 }
   0xa   :  { %312 = vmatmul.msk.bf16.vlgmr.msra.gmra.mxu0 %vm62_vm1, %v61_v4  ;;  %v348_v8 = vld [vmem:[%s522_s5] ss:$0 sm:$0xff]  ;;  %vm188_vm6 = vmand %vm186_vm3, %vm187_vm4  ;;  %v334_v55 = vld [vmem:[%s519_s2 + $0x3] sm:$0x1]  ;;  %vm244_vm8 = vcmask 1040384   ;;  %vm248_vm9 = vcmask 1041408  }
   0xb   :  { %313 = vmatmul.msk.bf16.vlgmr.msra.gmra.mxu1 %vm62_vm1, %v60_v5  ;;  %139 = vmatpush.bf16.msra.mxu2 %v339_v7  ;;  %v341_v18 = vld [vmem:[%s525_s8] sm:$0xff]  ;;  %v229_v58 = vunpack.c.l.bf16 %v334_v55  ;;  %vm251_vm10 = vcmask 1042432   ;;  %vm277_vm11 = vcmask 58368   ;;  %vm285_vm12 = vcmask 60418  }
   0xc   :  { %178 = vmatpush.bf16.msra.mxu3 %v341_v18  ;;  %v349_v19 = vld [vmem:[%s524_s7] ss:$0 sm:$0xff]  ;;  %vm293_vm13 = vcmask 62468   ;;  %vm301_vm14 = vcmask 64518  }
   0xd   :  { %v350_v25 = vld [vmem:[%s526_s9] ss:$0 sm:$0xff]  ;;  %s384_s9 = smov 112  }
   0xe   :  { %v151_v51 = vld [vmem:[%s527_s10] sm:$0xf] }
   0xf   :  { %v257_v52 = vsel %vm66_vm0, %v151_v51, 0  ;;  %v208_v59 = vld [vmem:[%s519_s2] sm:$0x1] }
  0x10   :  { %266 = vmatpush.bf16.msrb.mxu0 %v257_v52  ;;  %v209_v61 = vunpack.c.l.bf16 %v208_v59 }
  0x87   :  { %v79_v9 = vpop.f32.mrf.mxu0 }
  0x88   :  { %v98_v10 = vpop.f32.mrf.mxu1 }
  0x89   :  { %v99_v11 = vadd.f32 %v98_v10, %v79_v9 }
  0x8b   :  { %v105_v12 = vadd.f32 %v348_v8, %v99_v11 }
  0x8d   :  { %v106_v13 = vmax.f32 %v105_v12, 0.0 }
  0x8f   :  { %v112_v14 = vpack.c.bf16 %v106_v13, %v106_v13  ;;  %v81_v15 = vpop.f32.mrf.mxu0 }
  0x90   :  { %v100_v16 = vpop.f32.mrf.mxu1 }
  0x91   :  { %322 = vmatmul.msk.bf16.vlgmr.msra.gmra.mxu2 %vm128_vm2, %v112_v14 }
 0x114   :  { %v141_v20 = vpop.f32.mrf.mxu2 }
 0x115   :  { %v142_v21 = vadd.f32 %v349_v19, %v141_v20 }
 0x117   :  { %v145_v22 = vmax.f32 %v142_v21, 0.0 }
 0x119   :  { %v152_v23 = vpack.c.bf16 %v145_v22, %v145_v22 }
 0x11b   :  { %331 = vmatmul.msk.bf16.vlgmr.msra.gmra.mxu3 %vm128_vm2, %v152_v23 }
 0x11c   :  { %v143_v24 = vpop.f32.mrf.mxu2 }
 0x19e   :  { %v180_v26 = vpop.f32.mrf.mxu3 }
 0x19f   :  { %v181_v27 = vadd.f32 %v350_v25, %v180_v26 }
 0x1a1   :  { %v190_v28 = vand.u32 2147483647, %v181_v27  ;;  %v189_v42 = vmax.f32 %v181_v27, 0.0 }
 0x1a3   :  { %v191_v29 = vsub.f32 0.0, %v190_v28 }
 0x1a5   :  { %v192_v30 = vmul.f32 1.442695, %v191_v29 }
 0x1a6   :  { %v182_v31 = vpop.f32.mrf.mxu3 }
 0x1a7   :  { %351 = vpow2.f32 %v192_v30 }
 0x1ad   :  { %v352_v32 = vpop.eup %351 }
 0x1ae   :  { %v194_v34 = vadd.f32 1.0, %v352_v32  ;;  %v197_v35 = vmul.f32 -0.5, %v352_v32  ;;  %v200_v38 = vand.u32 2147483647, %v352_v32 }
 0x1b0   :  { %353 = vlog2.f32 %v194_v34  ;;  %v198_v37 = vadd.f32 1.0, %v197_v35  ;;  %vm201_vm5 = vcmp.lt.f32.partialorder %v200_v38, 0.0004427343 }
 0x1b2   :  { %v199_v41 = vmul.f32 %v352_v32, %v198_v37 }
 0x1b6   :  { %v354_v39 = vpop.eup %353 }
 0x1b7   :  { %v196_v40 = vmul.f32 0.6931472, %v354_v39 }
 0x1b9   :  { %v202_v43 = vsel %vm201_vm5, %v199_v41, %v196_v40 }
 0x1ba   :  { %v203_v44 = vadd.f32 %v202_v43, %v189_v42 }
 0x1bc   :  { %v204_v45 = vsel %vm188_vm6, %v203_v44, %v181_v27 }
 0x1bd   :  { %206 = vst.msk [vmem:[%s528_s11] sm:$0x3] %vm205_vm7, %v204_v45  ;;  %v295_v46 = vrot.slane %v204_v45, 2  ;;  %v279_v47 = vrot.slane %v204_v45, 6  ;;  %v207_v48 = vpack.c.bf16 %v204_v45, %v204_v45  ;;  %v287_v50 = vrot.slane %v204_v45, 4 }
 0x1bf   :  { %296 = vrot.lane.b32.xlu2 %v295_v46, %s384_s9  ;;  %280 = vrot.lane.b32.xlu1 %v279_v47, %s384_s9  ;;  %v210_v49 = vunpack.c.l.bf16 %v207_v48 }
 0x1c1   :  { %212 = vrot.lane.b32.xlu0 %v210_v49, %s385_s22 }
 0x1c7   :  { %288 = vrot.lane.b32.xlu1 %v287_v50, %s384_s9 }
 0x1c9   :  { %273 = vrot.lane.b32.xlu0 %v204_v45, %s384_s9 }
 0x219   :  { %v297_v22 = vpop.permute.xlu2 %296 }
 0x231   :  { %v281_v18 = vpop.permute.xlu1 %280 }
 0x233   :  { %v213_v60 = vpop.permute.xlu0 %212 }
 0x234   :  { %v220_v62 = vmul.f32 %v219_v56, %v213_v60  ;;  %v225_v63 = vmul.f32 %v224_v57, %v213_v60  ;;  %v230_v0 = vmul.f32 %v229_v58, %v213_v60  ;;  %v215_v4 = vmul.f32 %v213_v60, %v209_v61 }
 0x236   :  { %v221_v1 = vpack.c.bf16 %v220_v62, %v220_v62  ;;  %v226_v2 = vpack.c.bf16 %v225_v63, %v225_v63  ;;  %v231_v3 = vpack.c.bf16 %v230_v0, %v230_v0  ;;  %v216_v11 = vpack.c.bf16 %v215_v4, %v215_v4 }
 0x238   :  { %v233_v5 = vunpack.c.l.b16 %v221_v1  ;;  %v237_v6 = vunpack.c.l.b16 %v226_v2  ;;  %v241_v7 = vunpack.c.l.b16 %v231_v3 }
 0x239   :  { %v289_v19 = vpop.permute.xlu1 %288 }
 0x23a   :  { %v234_v8 = vpack.c.b16 %v233_v5, %v233_v5  ;;  %v238_v9 = vpack.c.b16 %v237_v6, %v237_v6  ;;  %v242_v10 = vpack.c.b16 %v241_v7, %v241_v7 }
 0x23b   :  { %v274_v20 = vpop.permute.xlu0 %273 }
 0x23c   :  { %v235_v12 = vrot.slane %v234_v8, 7  ;;  %v239_v13 = vrot.slane %v238_v9, 6  ;;  %v243_v14 = vrot.slane %v242_v10, 5 }
 0x23e   :  { %v247_v15 = vsel %vm244_vm8, %v216_v11, %v235_v12 }
 0x23f   :  { %v250_v16 = vsel %vm248_vm9, %v247_v15, %v239_v13 }
 0x240   :  { %v253_v17 = vsel %vm251_vm10, %v250_v16, %v243_v14 }
 0x241   :  { %335 = vmatmul.msk.bf16.vlgmr.msrb.gmra.mxu0 %vm62_vm1, %v253_v17 }
 0x2be   :  { %v268_v21 = vpop.f32.mrf.mxu0 }
 0x2bf   :  { %v276_v23 = vadd.f32 %v274_v20, %v268_v21  ;;  %v283_v24 = vadd.f32 %v281_v18, %v268_v21  ;;  %v291_v25 = vadd.f32 %v289_v19, %v268_v21  ;;  %v299_v26 = vadd.f32 %v297_v22, %v268_v21 }
 0x2c1   :  { %278 = vst.msk [vmem:[%s529_s12] sm:$0x3] %vm277_vm11, %v276_v23 }
 0x2c2   :  { %336 = vst.msk [vmem:[%s529_s12] sm:$0xc] %vm285_vm12, %v283_v24 }
 0x2c3   :  { %337 = vst.msk [vmem:[%s529_s12] sm:$0x30] %vm293_vm13, %v291_v25 }
 0x2c4   :  { %338 = vst.msk [vmem:[%s529_s12] sm:$0xc0] %vm301_vm14, %v299_v26 }
 0x2c6   :  { %v270_v27 = vpop.f32.mrf.mxu0 }
 0x2c7   :  { %311 = vsyncpa [#allocation3], 1 }

</bundles_post_ra>
